<compile_context>
chip_gen: v7x
topology: tpu7x:2x2x1
jax: 0.10.0
libtpu: 0.0.40
codegen_flags: <defaults>
</compile_context>

<pallas_src>
import jax
import jax.numpy as jnp
from jax import lax
from jax.experimental import pallas as pl
from jax.experimental.pallas import tpu as pltpu

# Module default buffers: mean = [0,0,0,0] (folded away), std = [.1,.1,.2,.2].
STD_XY = 0.1   # scales dx / dy (lanes with lane % 4 in {0, 1})
STD_WH = 0.2   # scales dw / dh (lanes with lane % 4 in {2, 3})


def bbox_transform_kernel(boxes_ref, deltas_ref, out_ref):
    b = boxes_ref[...]            # (sub, lane)  interleaved x1, y1, x2, y2
    d = deltas_ref[...]           # (sub, lane)  interleaved dx, dy, dw, dh
    lanes = b.shape[-1]

    # ---- per-lane constants, built once per step at (1, lane) --------------
    lane = lax.broadcasted_iota(jnp.int32, (1, lanes), 1)
    is_lo = (lane & 3) < 2                        # x1/y1 (and dx/dy) lanes
    # Roll-convention-independent partner selection: whichever roll direction
    # actually sources lane +/-2 is detected from the rolled iota.  Wrap-around
    # lanes of the "wrong" direction are discarded by the select.
    partner_lane = jnp.where(is_lo, lane + 2, lane - 2)
    use_fwd = pltpu.roll(lane, 2, axis=1) == partner_lane
    sign = jnp.where(is_lo, 1.0, -1.0).astype(b.dtype)        # (1, lane)
    half_sign = jnp.where(is_lo, -0.5, 0.5).astype(b.dtype)   # (1, lane)

    def partner(x):   # value of the lane two away (x1<->x2, y1<->y2 pairing)
        return jnp.where(use_fwd,
                         pltpu.roll(x, 2, axis=1),
                         pltpu.roll(x, lanes - 2, axis=1))

    # ---- full-tile compute --------------------------------------------------
    b_p = partner(b)                    # partner coordinate
    d_p = partner(d)                    # partner delta

    min_c = jnp.where(is_lo, b, b_p)    # x1 / y1 at every lane
    size = (b_p - b) * sign             # width (x lanes) / height (y lanes)
    ctr = min_c + 0.5 * size            # ctr_x / ctr_y  (matches ref exactly)

    off = jnp.where(is_lo, d, d_p) * STD_XY   # scaled dx / dy at every lane
    scl = jnp.where(is_lo, d_p, d) * STD_WH   # scaled dw / dh at every lane

    pred_ctr = ctr + off * size               # pred_ctr_x / pred_ctr_y
    pred_sz = jnp.exp(scl) * size             # pred_w / pred_h

    # x1/y1 lanes: ctr - 0.5*sz ; x2/y2 lanes: ctr + 0.5*sz.  Dense store.
    out_ref[...] = pred_ctr + half_sign * pred_sz


def bbox_transform(boxes, deltas, *, lane=512, sub=1024):
    """boxes, deltas: (B, N, 4) -> pred_boxes (B, N, 4).  No transposes."""
    B, N, C = boxes.shape
    assert C == 4 and deltas.shape == boxes.shape
    assert lane % 128 == 0 and lane % 4 == 0 and sub % 8 == 0
    dtype = boxes.dtype

    total = B * N * 4
    rows = pl.cdiv(total, lane)
    padded = rows * lane                     # pad at most lane-1 elements

    boxes_f = boxes.reshape(-1)
    deltas_f = deltas.reshape(-1)
    if padded != total:
        # Only hit when B*N is not a multiple of lane//4 (rare); pad is tiny.
        boxes_f = jnp.pad(boxes_f, (0, padded - total))
        deltas_f = jnp.pad(deltas_f, (0, padded - total))

    # Shrink the sublane tile so the 1-D grid has >= 2 steps when possible
    # (v7x megacore) and so tiny inputs don't over-allocate VMEM.
    while sub > 8 and pl.cdiv(rows, sub) < 2:
        sub //= 2
    if rows < sub:
        sub = rows                           # full-dim block is always legal

    grid = (pl.cdiv(rows, sub),)             # partial last block is masked

    # VMEM: 3 arrays x 2 pipeline buffers x sub*lane*4 B  (12 MiB at the
    # defaults) — within every generation's scoped-VMEM default.
    out_flat = pl.pallas_call(
        bbox_transform_kernel,
        out_shape=jax.ShapeDtypeStruct((rows, lane), dtype),
        grid=grid,
        in_specs=[
            pl.BlockSpec((sub, lane), lambda i: (i, 0)),
            pl.BlockSpec((sub, lane), lambda i: (i, 0)),
        ],
        out_specs=pl.BlockSpec((sub, lane), lambda i: (i, 0)),
        compiler_params=pltpu.CompilerParams(
            dimension_semantics=("parallel",)),
    )(boxes_f.reshape(rows, lane), deltas_f.reshape(rows, lane))

    out = out_flat.reshape(-1)
    if padded != total:
        out = out[:total]
    return out.reshape(B, N, 4)


def bbox_transform_ref(boxes, deltas):
    """Pure-JAX reference mirroring the PyTorch forward exactly."""
    mean = jnp.zeros((4,), jnp.float32)
    std = jnp.asarray([0.1, 0.1, 0.2, 0.2], jnp.float32)
    widths = boxes[:, :, 2] - boxes[:, :, 0]
    heights = boxes[:, :, 3] - boxes[:, :, 1]
    ctr_x = boxes[:, :, 0] + 0.5 * widths
    ctr_y = boxes[:, :, 1] + 0.5 * heights
    dx = deltas[:, :, 0] * std[0] + mean[0]
    dy = deltas[:, :, 1] * std[1] + mean[1]
    dw = deltas[:, :, 2] * std[2] + mean[2]
    dh = deltas[:, :, 3] * std[3] + mean[3]
    pred_ctr_x = ctr_x + dx * widths
    pred_ctr_y = ctr_y + dy * heights
    pred_w = jnp.exp(dw) * widths
    pred_h = jnp.exp(dh) * heights
    return jnp.stack(
        [pred_ctr_x - 0.5 * pred_w,
         pred_ctr_y - 0.5 * pred_h,
         pred_ctr_x + 0.5 * pred_w,
         pred_ctr_y + 0.5 * pred_h], axis=2)


def _make_inputs(key, B, N):
    kb, kd, ke = jax.random.split(key, 3)
    xy1 = jax.random.uniform(kb, (B, N, 2), jnp.float32, 0.0, 50.0)
    wh = jax.random.uniform(kd, (B, N, 2), jnp.float32, 1.0, 30.0)
    boxes = jnp.concatenate([xy1, xy1 + wh], axis=2)          # (B, N, 4)
    deltas = jax.random.normal(ke, (B, N, 4), jnp.float32)    # (B, N, 4)
    return boxes, deltas


if __name__ == "__main__":
    key = jax.random.PRNGKey(0)

    # Case 1: small shape, no padding, single (full-dim) block.
    boxes, deltas = _make_inputs(key, B=2, N=256)
    out = bbox_transform(boxes, deltas)
    jax.block_until_ready(out)
    ref = bbox_transform_ref(boxes, deltas)
    assert out.shape == (2, 256, 4) and out.dtype == jnp.float32
    assert jnp.allclose(out, ref, rtol=1e-5, atol=1e-5)

    # Case 2: larger anchor count, no padding, >=2-step parallel grid.
    boxes2, deltas2 = _make_inputs(jax.random.fold_in(key, 1), B=2, N=8192)
    out2 = bbox_transform(boxes2, deltas2)
    jax.block_until_ready(out2)
    ref2 = bbox_transform_ref(boxes2, deltas2)
    assert jnp.allclose(out2, ref2, rtol=1e-5, atol=1e-5)

    # Case 3: ragged total (B*N*4 not a multiple of lane) -> small pad path.
    boxes3, deltas3 = _make_inputs(jax.random.fold_in(key, 2), B=1, N=300)
    out3 = bbox_transform(boxes3, deltas3)
    jax.block_until_ready(out3)
    ref3 = bbox_transform_ref(boxes3, deltas3)
    assert jnp.allclose(out3, ref3, rtol=1e-5, atol=1e-5)

    print("KERNEL_OK")
</pallas_src>

<mosaic_0001>
module attributes {stable_mosaic.version = 11 : i64} {
  func.func @bbox_transform_kernel(%arg0: i32, %arg1: memref<4x512xf32, #tpu.memory_space<vmem>>, %arg2: memref<4x512xf32, #tpu.memory_space<vmem>>, %arg3: memref<4x512xf32, #tpu.memory_space<vmem>>) attributes {dimension_semantics = [#tpu.dimension_semantics<parallel>], iteration_bounds = array<i64: 1>, scalar_prefetch = 0 : i64, scratch_operands = 0 : i64, tpu.core_type = #tpu.core_type<tc>, window_params = [{transform_indices = @transform_0, window_bounds = array<i64: 4, 512>}, {transform_indices = @transform_1, window_bounds = array<i64: 4, 512>}, {transform_indices = @transform_2, window_bounds = array<i64: 4, 512>}]} {
    %c0 = arith.constant 0 : index
    %c0_0 = arith.constant 0 : index
    %0 = vector.load %arg1[%c0, %c0_0] : memref<4x512xf32, #tpu.memory_space<vmem>>, vector<4x512xf32>
    %c0_1 = arith.constant 0 : index
    %c0_2 = arith.constant 0 : index
    %1 = vector.load %arg2[%c0_1, %c0_2] : memref<4x512xf32, #tpu.memory_space<vmem>>, vector<4x512xf32>
    %2 = tpu.iota {dimensions = array<i32: 1>} : vector<1x512xi32>
    %c3_i32 = arith.constant 3 : i32
    %3 = vector.broadcast %c3_i32 : i32 to vector<1x512xi32>
    %4 = arith.andi %2, %3 : vector<1x512xi32>
    %c2_i32 = arith.constant 2 : i32
    %5 = vector.broadcast %c2_i32 : i32 to vector<1x512xi32>
    %6 = arith.cmpi slt, %4, %5 : vector<1x512xi32>
    %c2_i32_3 = arith.constant 2 : i32
    %7 = vector.broadcast %c2_i32_3 : i32 to vector<1x512xi32>
    %8 = arith.addi %2, %7 : vector<1x512xi32>
    %c2_i32_4 = arith.constant 2 : i32
    %9 = vector.broadcast %c2_i32_4 : i32 to vector<1x512xi32>
    %10 = arith.subi %2, %9 : vector<1x512xi32>
    %11 = arith.select %6, %8, %10 : vector<1x512xi1>, vector<1x512xi32>
    %c2_i32_5 = arith.constant 2 : i32
    %12 = tpu.dynamic_rotate %2 by %c2_i32_5 dim 1 : vector<1x512xi32>, i32 -> vector<1x512xi32>
    %13 = arith.cmpi eq, %12, %11 : vector<1x512xi32>
    %cst = arith.constant 1.000000e+00 : f32
    %cst_6 = arith.constant -1.000000e+00 : f32
    %14 = vector.broadcast %cst : f32 to vector<1x512xf32>
    %15 = vector.broadcast %cst_6 : f32 to vector<1x512xf32>
    %16 = arith.select %6, %14, %15 : vector<1x512xi1>, vector<1x512xf32>
    %cst_7 = arith.constant -5.000000e-01 : f32
    %cst_8 = arith.constant 5.000000e-01 : f32
    %17 = vector.broadcast %cst_7 : f32 to vector<1x512xf32>
    %18 = vector.broadcast %cst_8 : f32 to vector<1x512xf32>
    %19 = arith.select %6, %17, %18 : vector<1x512xi1>, vector<1x512xf32>
    %c2_i32_9 = arith.constant 2 : i32
    %20 = tpu.dynamic_rotate %0 by %c2_i32_9 dim 1 : vector<4x512xf32>, i32 -> vector<4x512xf32>
    %c510_i32 = arith.constant 510 : i32
    %21 = tpu.dynamic_rotate %0 by %c510_i32 dim 1 : vector<4x512xf32>, i32 -> vector<4x512xf32>
    %22 = vector.shape_cast %13 : vector<1x512xi1> to vector<1x512xi1>
    %23 = vector.broadcast %22 : vector<1x512xi1> to vector<4x512xi1>
    %24 = arith.select %23, %20, %21 : vector<4x512xi1>, vector<4x512xf32>
    %c2_i32_10 = arith.constant 2 : i32
    %25 = tpu.dynamic_rotate %1 by %c2_i32_10 dim 1 : vector<4x512xf32>, i32 -> vector<4x512xf32>
    %c510_i32_11 = arith.constant 510 : i32
    %26 = tpu.dynamic_rotate %1 by %c510_i32_11 dim 1 : vector<4x512xf32>, i32 -> vector<4x512xf32>
    %27 = vector.shape_cast %13 : vector<1x512xi1> to vector<1x512xi1>
    %28 = vector.broadcast %27 : vector<1x512xi1> to vector<4x512xi1>
    %29 = arith.select %28, %25, %26 : vector<4x512xi1>, vector<4x512xf32>
    %30 = vector.shape_cast %6 : vector<1x512xi1> to vector<1x512xi1>
    %31 = vector.broadcast %30 : vector<1x512xi1> to vector<4x512xi1>
    %32 = arith.select %31, %0, %24 : vector<4x512xi1>, vector<4x512xf32>
    %33 = arith.subf %24, %0 : vector<4x512xf32>
    %34 = vector.broadcast %16 : vector<1x512xf32> to vector<4x512xf32>
    %35 = arith.mulf %33, %34 : vector<4x512xf32>
    %cst_12 = arith.constant 5.000000e-01 : f32
    %36 = vector.broadcast %cst_12 : f32 to vector<4x512xf32>
    %37 = arith.mulf %36, %35 : vector<4x512xf32>
    %38 = arith.addf %32, %37 : vector<4x512xf32>
    %39 = vector.shape_cast %6 : vector<1x512xi1> to vector<1x512xi1>
    %40 = vector.broadcast %39 : vector<1x512xi1> to vector<4x512xi1>
    %41 = arith.select %40, %1, %29 : vector<4x512xi1>, vector<4x512xf32>
    %cst_13 = arith.constant 1.000000e-01 : f32
    %42 = vector.broadcast %cst_13 : f32 to vector<4x512xf32>
    %43 = arith.mulf %41, %42 : vector<4x512xf32>
    %44 = vector.shape_cast %6 : vector<1x512xi1> to vector<1x512xi1>
    %45 = vector.broadcast %44 : vector<1x512xi1> to vector<4x512xi1>
    %46 = arith.select %45, %29, %1 : vector<4x512xi1>, vector<4x512xf32>
    %cst_14 = arith.constant 2.000000e-01 : f32
    %47 = vector.broadcast %cst_14 : f32 to vector<4x512xf32>
    %48 = arith.mulf %46, %47 : vector<4x512xf32>
    %49 = arith.mulf %43, %35 : vector<4x512xf32>
    %50 = arith.addf %38, %49 : vector<4x512xf32>
    %51 = math.exp %48 : vector<4x512xf32>
    %52 = arith.mulf %51, %35 : vector<4x512xf32>
    %53 = vector.broadcast %19 : vector<1x512xf32> to vector<4x512xf32>
    %54 = arith.mulf %53, %52 : vector<4x512xf32>
    %55 = arith.addf %50, %54 : vector<4x512xf32>
    %c0_15 = arith.constant 0 : index
    %c0_16 = arith.constant 0 : index
    %56 = vector.load %arg3[%c0_15, %c0_16] : memref<4x512xf32, #tpu.memory_space<vmem>>, vector<4x512xf32>
    tpu.vector_store %arg3[%c0_15, %c0_16], %55 {strides = array<i32>} : memref<4x512xf32, #tpu.memory_space<vmem>>, vector<4x512xf32>,
    return
  }
  func.func @transform_0(%arg0: i32) -> (i32, i32) {
    %c0_i32 = arith.constant 0 : i32
    %c0_i32_0 = arith.constant 0 : i32
    return %arg0, %c0_i32 : i32, i32
  }
  func.func @transform_1(%arg0: i32) -> (i32, i32) {
    %c0_i32 = arith.constant 0 : i32
    %c0_i32_0 = arith.constant 0 : i32
    return %arg0, %c0_i32 : i32, i32
  }
  func.func @transform_2(%arg0: i32) -> (i32, i32) {
    %c0_i32 = arith.constant 0 : i32
    %c0_i32_0 = arith.constant 0 : i32
    return %arg0, %c0_i32 : i32, i32
  }
}

</mosaic_0001>

<bundles_post_ra>
// kernel: tpu_custom_call.1
= control target key start
LH: loop header
LB: loop body
LE: loop exit
PB: predicated region body
PF: predicated region fallthrough
CT: control target
= control target key end

     0   :  { %7 = vsyncpa [#allocation3], 0  ;;  %s643_s0 = inlined_call_operand.hbm [shape: f32[4,512], index: 0, kind: input, shape index: {}]   ;;  %s644_s1 = inlined_call_operand.hbm [shape: f32[4,512], index: 1, kind: input, shape index: {}]   ;;  %s645_s2 = inlined_call_operand.hbm [shape: f32[4,512], index: 2, kind: output, shape index: {}]  }
   0x1   :  { %8 = vsyncpa [#allocation6], 0 }
   0x2   :  { %9 = vsyncpa [#allocation4], 0  ;;  %s377_s9 = smov [#allocation2]   ;;  %s378_s11 = smov [#allocation5]  }
   0x3   :  { %s16_s10 = sshll.u32 %s377_s9, 4  ;;  %s26_s12 = sshll.u32 %s378_s11, 4  ;;  %s17_s10 = int_to_ptr.vmem [resolvable:$true] %s16_s10  ;;  %s27_s12 = int_to_ptr.vmem [resolvable:$true] %s26_s12 }
   0x4   :  { %s305_s15 = scalar_lea.hbm %s643_s0, 256 }
   0x5   :  { %p306_p0 = scmp.ne.s32.totalorder %s643_s0, %s305_s15  ;;  %p309_p1 = scmp.lt.u32.totalorder %s305_s15, %s643_s0 }
   0x7   :  { %p311_p2 = pnand %p309_p1, %p306_p0 }
   0x9   :  { %314 = shalt.err (!%p311_p2)
}
   0xa   :  { %s315_s20 = scalar_lea.vmem %s17_s10, 256  ;;  %p320_p4 = scmp.lt.s32.totalorder %s17_s10, %s17_s10 }
   0xb   :  { %p316_p3 = scmp.ne.s32.totalorder %s17_s10, %s315_s20  ;;  %p321_p5 = scmp.lt.s32.totalorder %s315_s20, %s315_s20 }
   0xd   :  { %p322_p6 = por %p321_p5, %p320_p4 }
   0xf   :  { %p323_p7 = pnand %p322_p6, %p316_p3 }
  0x11   :  { %326 = shalt.err (!%p323_p7)
}
  0x12   :  { %19 = dma.hbm_to_vmem [thread:$0]  %s643_s0, 256, %s17_s10, [#allocation3]  }
  0x13   :  { %s327_s25 = scalar_lea.hbm %s644_s1, 256 }
  0x14   :  { %p328_p8 = scmp.ne.s32.totalorder %s644_s1, %s327_s25  ;;  %p331_p9 = scmp.lt.u32.totalorder %s327_s25, %s644_s1 }
  0x16   :  { %p333_p10 = pnand %p331_p9, %p328_p8 }
  0x18   :  { %336 = shalt.err (!%p333_p10)
}
  0x19   :  { %s337_s30 = scalar_lea.vmem %s27_s12, 256  ;;  %p342_p12 = scmp.lt.s32.totalorder %s27_s12, %s27_s12 }
  0x1a   :  { %p338_p11 = scmp.ne.s32.totalorder %s27_s12, %s337_s30  ;;  %p343_p13 = scmp.lt.s32.totalorder %s337_s30, %s337_s30 }
  0x1c   :  { %p344_p0 = por %p343_p13, %p342_p12 }
  0x1e   :  { %p345_p1 = pnand %p344_p0, %p338_p11 }
  0x20   :  { %348 = shalt.err (!%p345_p1)
}
  0x21   :  { %29 = dma.hbm_to_vmem [thread:$0]  %s644_s1, 256, %s27_s12, [#allocation6]  }
  0x22   :  { %371 = dma.done.wait [#allocation3], 256  }
  0x23   :  { %372 = vsyncadd [#allocation3], 4294967040  ;;  %v40_v0 = vlaneseq }
  0x24   :  { %373 = dma.done.wait [#allocation6], 256  }
  0x25   :  { %374 = vsyncadd [#allocation6], 4294967040  ;;  %v424_v1 = vand.u32 127, %v40_v0  ;;  %s379_s4 = smov 2   ;;  %v430_v5 = vld [vmem:[#allocation5] sm:$0xff]  ;;  %v436_v7 = vld [vmem:[#allocation5 + $0x8] sm:$0xff] }
  0x26   :  { %v434_v6 = vcombine.high %v430_v5, %v430_v5  ;;  %v442_v8 = vcombine.high %v436_v7, %v436_v7  ;;  %s380_s1 = smov 126   ;;  %v448_v9 = vld [vmem:[#allocation2] sm:$0xff]  ;;  %v456_v11 = vld [vmem:[#allocation2 + $0x8] sm:$0xff]  ;;  %v126_v23 = vshrl.u32 %v40_v0, 7  ;;  %v381_v41 = vmov 0   ;;  %s384_s5 = smov [#allocation7]  }
  0x27   :  { %65 = vrot.lane.b32.xlu0 %v424_v1, %s379_s4  ;;  %v43_v2 = vadd.s32 256, %v424_v1  ;;  %v42_v3 = vadd.s32 128, %v424_v1  ;;  %v44_v4 = vadd.s32 384, %v424_v1  ;;  %v454_v10 = vcombine.high %v448_v9, %v448_v9  ;;  %s271_s6 = sshll.u32 %s384_s5, 4  ;;  %s272_s6 = int_to_ptr.vmem [resolvable:$true] %s271_s6 }
  0x28   :  { %v462_v12 = vcombine.high %v456_v11, %v456_v11  ;;  %v45_v15 = vand.u32 3, %v424_v1  ;;  %v53_v25 = vadd.s32 2, %v424_v1  ;;  %v281_v27 = vadd.s32 4294967294, %v424_v1  ;;  %s349_s7 = scalar_lea.vmem %s272_s6, 256  ;;  %p354_p3 = scmp.lt.s32.totalorder %s272_s6, %s272_s6 }
  0x29   :  { %69 = vrot.lane.b32.xlu1 %v43_v2, %s379_s4  ;;  %v47_v13 = vand.u32 3, %v43_v2  ;;  %v46_v14 = vand.u32 3, %v42_v3  ;;  %v48_v16 = vand.u32 3, %v44_v4  ;;  %v55_v17 = vadd.s32 2, %v43_v2  ;;  %p350_p2 = scmp.ne.s32.totalorder %s272_s6, %s349_s7  ;;  %p355_p4 = scmp.lt.s32.totalorder %s349_s7, %s349_s7 }
  0x2a   :  { %v283_v18 = vadd.s32 4294967294, %v43_v2  ;;  %v54_v19 = vadd.s32 2, %v42_v3  ;;  %v282_v20 = vadd.s32 4294967294, %v42_v3  ;;  %v56_v26 = vadd.s32 2, %v44_v4 }
  0x2b   :  { %67 = vrot.lane.b32.xlu0 %v42_v3, %s379_s4  ;;  %vm471_vm0 = vcmp.lt.s32.totalorder %v47_v13, 2  ;;  %vm475_vm1 = vcmp.lt.s32.totalorder %v46_v14, 2  ;;  %v284_v28 = vadd.s32 4294967294, %v44_v4  ;;  %vm73_vm2 = vcmp.lt.s32.totalorder %v424_v1, 2  ;;  %p356_p5 = por %p355_p4, %p354_p3 }
  0x2c   :  { %vm482_vm3 = vcmp.lt.s32.totalorder %v45_v15, 2  ;;  %vm486_vm4 = vcmp.lt.s32.totalorder %v48_v16, 2  ;;  %v63_v32 = vsel %vm471_vm0, %v55_v17, %v283_v18  ;;  %v62_v33 = vsel %vm475_vm1, %v54_v19, %v282_v20 }
  0x2d   :  { %71 = vrot.lane.b32.xlu1 %v44_v4, %s379_s4  ;;  %v127_v34 = vsub.s32 0, %v126_v23  ;;  %v61_v38 = vsel %vm482_vm3, %v53_v25, %v281_v27  ;;  %v64_v39 = vsel %vm486_vm4, %v56_v26, %v284_v28  ;;  %vm116_vm9 = vcmp.lt.s32.totalorder %v424_v1, 126  ;;  %p357_p6 = pnand %p356_p5, %p350_p2 }
  0x2f   :  { %155 = vrot.lane.b32.xlu0 %v430_v5, %s379_s4 }
  0x31   :  { %157 = vrot.lane.b32.xlu1 %v434_v6, %s379_s4 }
  0x33   :  { %159 = vrot.lane.b32.xlu0 %v436_v7, %s379_s4 }
  0x35   :  { %161 = vrot.lane.b32.xlu1 %v442_v8, %s379_s4 }
  0x37   :  { %167 = vrot.lane.b32.xlu0 %v430_v5, %s380_s1 }
  0x39   :  { %169 = vrot.lane.b32.xlu1 %v434_v6, %s380_s1 }
  0x3b   :  { %171 = vrot.lane.b32.xlu0 %v436_v7, %s380_s1 }
  0x3d   :  { %173 = vrot.lane.b32.xlu1 %v442_v8, %s380_s1 }
  0x3f   :  { %96 = vrot.lane.b32.xlu0 %v448_v9, %s379_s4 }
  0x41   :  { %98 = vrot.lane.b32.xlu1 %v454_v10, %s379_s4 }
  0x43   :  { %100 = vrot.lane.b32.xlu0 %v456_v11, %s379_s4 }
  0x45   :  { %102 = vrot.lane.b32.xlu1 %v462_v12, %s379_s4 }
  0x47   :  { %108 = vrot.lane.b32.xlu0 %v448_v9, %s380_s1 }
  0x49   :  { %110 = vrot.lane.b32.xlu1 %v454_v10, %s380_s1 }
  0x4b   :  { %112 = vrot.lane.b32.xlu0 %v456_v11, %s380_s1 }
  0x4d   :  { %114 = vrot.lane.b32.xlu1 %v462_v12, %s380_s1 }
  0x99   :  { %v66_v21 = vpop.permute.xlu0 %65 }
  0x9b   :  { %v70_v29 = vpop.permute.xlu1 %69 }
  0x9d   :  { %v68_v35 = vpop.permute.xlu0 %67 }
  0x9e   :  { %v75_v36 = vsel %vm73_vm2, %v68_v35, %v70_v29  ;;  %v76_v37 = vsel %vm73_vm2, %v66_v21, %v68_v35 }
  0x9f   :  { %vm79_vm5 = vcmp.eq.s32.totalorder %v76_v37, %v62_v33  ;;  %vm80_vm6 = vcmp.eq.s32.totalorder %v75_v36, %v63_v32  ;;  %v72_v40 = vpop.permute.xlu1 %71 }
  0xa0   :  { %v122_v42 = vsel %vm79_vm5, 1, %v381_v41  ;;  %v123_v43 = vsel %vm80_vm6, 1, %v381_v41  ;;  %v74_v44 = vsel %vm73_vm2, %v70_v29, %v72_v40  ;;  %v77_v45 = vsel %vm73_vm2, %v72_v40, %v66_v21 }
  0xa1   :  { %v132_v46 = vrot.slane %v122_v42, %v127_v34  ;;  %v136_v47 = vrot.slane %v123_v43, %v127_v34  ;;  %vm78_vm7 = vcmp.eq.s32.totalorder %v77_v45, %v61_v38  ;;  %vm81_vm8 = vcmp.eq.s32.totalorder %v74_v44, %v64_v39  ;;  %v156_v48 = vpop.permute.xlu0 %155 }
  0xa2   :  { %v121_v49 = vsel %vm78_vm7, 1, %v381_v41  ;;  %v124_v50 = vsel %vm81_vm8, 1, %v381_v41  ;;  %v382_v43 = vmov -1.0  }
  0xa3   :  { %v128_v51 = vrot.slane %v121_v49, %v127_v34  ;;  %v140_v52 = vrot.slane %v124_v50, %v127_v34  ;;  %v158_v53 = vpop.permute.xlu1 %157  ;;  %vm515_vm11 = vcmp.eq.s32.totalorder %v132_v46, 1  ;;  %vm531_vm12 = vcmp.eq.s32.totalorder %v136_v47, 1 }
  0xa4   :  { %v165_v0 = vsel %vm73_vm2, %v156_v48, %v158_v53  ;;  %v82_v44 = vsel %vm482_vm3, 1.0, %v382_v43  ;;  %v83_v46 = vsel %vm475_vm1, 1.0, %v382_v43  ;;  %v85_v47 = vsel %vm486_vm4, 1.0, %v382_v43 }
  0xa5   :  { %v160_v54 = vpop.permute.xlu0 %159  ;;  %vm507_vm10 = vcmp.eq.s32.totalorder %v128_v51, 1  ;;  %vm549_vm13 = vcmp.eq.s32.totalorder %v140_v52, 1  ;;  %v383_v50 = vmov 0.5  }
  0xa6   :  { %v164_v14 = vsel %vm73_vm2, %v158_v53, %v160_v54  ;;  %v86_v51 = vsel %vm482_vm3, -0.5, %v383_v50 }
  0xa7   :  { %v162_v55 = vpop.permute.xlu1 %161 }
  0xa8   :  { %v166_v59 = vsel %vm73_vm2, %v162_v55, %v156_v48  ;;  %v163_v21 = vsel %vm73_vm2, %v160_v54, %v162_v55  ;;  %v87_v54 = vsel %vm475_vm1, -0.5, %v383_v50  ;;  %v88_v55 = vsel %vm471_vm0, -0.5, %v383_v50 }
  0xa9   :  { %v168_v56 = vpop.permute.xlu0 %167 }
  0xab   :  { %v170_v57 = vpop.permute.xlu1 %169 }
  0xac   :  { %v177_v60 = vsel %vm116_vm9, %v168_v56, %v170_v57 }
  0xad   :  { %v179_v62 = vsel %vm507_vm10, %v166_v59, %v177_v60  ;;  %v172_v63 = vpop.permute.xlu0 %171 }
  0xae   :  { %v211_v2 = vsel %vm482_vm3, %v430_v5, %v179_v62  ;;  %v219_v3 = vsel %vm482_vm3, %v179_v62, %v430_v5  ;;  %v176_v4 = vsel %vm116_vm9, %v170_v57, %v172_v63 }
  0xaf   :  { %v180_v15 = vsel %vm515_vm11, %v165_v0, %v176_v4  ;;  %v174_v16 = vpop.permute.xlu1 %173  ;;  %v223_v23 = vmul.f32 0.2, %v219_v3  ;;  %v215_v60 = vmul.f32 0.1, %v211_v2 }
  0xb0   :  { %v212_v17 = vsel %vm475_vm1, %v434_v6, %v180_v15  ;;  %v220_v5 = vsel %vm475_vm1, %v180_v15, %v434_v6  ;;  %v175_v18 = vsel %vm116_vm9, %v172_v63, %v174_v16  ;;  %v178_v19 = vsel %vm116_vm9, %v174_v16, %v168_v56 }
  0xb1   :  { %v181_v25 = vsel %vm531_vm12, %v164_v14, %v175_v18  ;;  %v97_v26 = vpop.permute.xlu0 %96  ;;  %v224_v27 = vmul.f32 0.2, %v220_v5  ;;  %v559_v6 = vsel %vm549_vm13, %v163_v21, %v178_v19  ;;  %v235_v36 = vmul.f32 1.442695, %v223_v23 }
  0xb2   :  { %v213_v28 = vsel %vm471_vm0, %v436_v7, %v181_v25  ;;  %v221_v29 = vsel %vm471_vm0, %v181_v25, %v436_v7  ;;  %v214_v32 = vsel %vm486_vm4, %v442_v8, %v559_v6  ;;  %v222_v34 = vsel %vm486_vm4, %v559_v6, %v442_v8 }
  0xb3   :  { %v99_v33 = vpop.permute.xlu1 %98  ;;  %v225_v35 = vmul.f32 0.2, %v221_v29  ;;  %v226_v37 = vmul.f32 0.2, %v222_v34  ;;  %v237_v39 = vmul.f32 1.442695, %v224_v27  ;;  %297 = vpow2.f32 %v235_v36 }
  0xb4   :  { %v84_v8 = vsel %vm471_vm0, 1.0, %v382_v43  ;;  %v106_v56 = vsel %vm73_vm2, %v97_v26, %v99_v33  ;;  %v216_v62 = vmul.f32 0.1, %v212_v17  ;;  %v217_v15 = vmul.f32 0.1, %v213_v28 }
  0xb5   :  { %v101_v38 = vpop.permute.xlu0 %100  ;;  %v239_v41 = vmul.f32 1.442695, %v225_v35  ;;  %v241_v7 = vmul.f32 1.442695, %v226_v37  ;;  %299 = vpow2.f32 %v237_v39  ;;  %v218_v20 = vmul.f32 0.1, %v214_v32 }
  0xb6   :  { %v105_v63 = vsel %vm73_vm2, %v99_v33, %v101_v38  ;;  %v89_v36 = vsel %vm486_vm4, -0.5, %v383_v50 }
  0xb7   :  { %v103_v40 = vpop.permute.xlu1 %102  ;;  %301 = vpow2.f32 %v239_v41 }
  0xb8   :  { %v107_v48 = vsel %vm73_vm2, %v103_v40, %v97_v26  ;;  %303 = vpow2.f32 %v241_v7  ;;  %v104_v2 = vsel %vm73_vm2, %v101_v38, %v103_v40 }
  0xb9   :  { %v109_v42 = vpop.permute.xlu0 %108 }
  0xbb   :  { %v111_v45 = vpop.permute.xlu1 %110 }
  0xbc   :  { %v119_v49 = vsel %vm116_vm9, %v109_v42, %v111_v45 }
  0xbd   :  { %v145_v52 = vsel %vm507_vm10, %v107_v48, %v119_v49  ;;  %v113_v53 = vpop.permute.xlu0 %112 }
  0xbe   :  { %v191_v57 = vsel %vm482_vm3, %v448_v9, %v145_v52  ;;  %v195_v59 = vsub.f32 %v145_v52, %v448_v9  ;;  %v118_v58 = vsel %vm116_vm9, %v111_v45, %v113_v53 }
  0xbf   :  { %v146_v0 = vsel %vm515_vm11, %v106_v56, %v118_v58  ;;  %v115_v3 = vpop.permute.xlu1 %114 }
  0xc0   :  { %v199_v4 = vmul.f32 %v195_v59, %v82_v44  ;;  %v192_v30 = vsel %vm475_vm1, %v454_v10, %v146_v0  ;;  %v196_v14 = vsub.f32 %v146_v0, %v454_v10  ;;  %v117_v9 = vsel %vm116_vm9, %v113_v53, %v115_v3  ;;  %v298_v10 = vpop.eup %297 }
  0xc1   :  { %v120_v16 = vsel %vm116_vm9, %v115_v3, %v109_v42  ;;  %v147_v61 = vsel %vm531_vm12, %v105_v63, %v117_v9  ;;  %v300_v23 = vpop.eup %299 }
  0xc2   :  { %v203_v17 = vmul.f32 0.5, %v199_v4  ;;  %v227_v5 = vmul.f32 %v215_v60, %v199_v4  ;;  %v200_v18 = vmul.f32 %v196_v14, %v83_v46  ;;  %v148_v24 = vsel %vm549_vm13, %v104_v2, %v120_v16  ;;  %v302_v34 = vpop.eup %301 }
  0xc3   :  { %v193_v19 = vsel %vm471_vm0, %v456_v11, %v147_v61  ;;  %v194_v21 = vsel %vm486_vm4, %v462_v12, %v148_v24  ;;  %v197_v1 = vsub.f32 %v147_v61, %v456_v11  ;;  %v198_v13 = vsub.f32 %v148_v24, %v462_v12  ;;  %v304_v38 = vpop.eup %303 }
  0xc4   :  { %v207_v25 = vadd.f32 %v203_v17, %v191_v57  ;;  %v204_v26 = vmul.f32 0.5, %v200_v18  ;;  %v228_v27 = vmul.f32 %v216_v62, %v200_v18  ;;  %v243_v6 = vmul.f32 %v298_v10, %v199_v4 }
  0xc5   :  { %v201_v28 = vmul.f32 %v197_v1, %v84_v8  ;;  %v202_v29 = vmul.f32 %v198_v13, %v85_v47  ;;  %v244_v33 = vmul.f32 %v300_v23, %v200_v18 }
  0xc6   :  { %v231_v22 = vadd.f32 %v227_v5, %v207_v25  ;;  %v208_v35 = vadd.f32 %v204_v26, %v192_v30  ;;  %v247_v37 = vmul.f32 %v243_v6, %v86_v51 }
  0xc7   :  { %v205_v11 = vmul.f32 0.5, %v201_v28  ;;  %v206_v39 = vmul.f32 0.5, %v202_v29  ;;  %v229_v12 = vmul.f32 %v217_v15, %v201_v28  ;;  %v230_v40 = vmul.f32 %v218_v20, %v202_v29 }
  0xc8   :  { %v232_v41 = vadd.f32 %v228_v27, %v208_v35  ;;  %v245_v7 = vmul.f32 %v302_v34, %v201_v28  ;;  %v246_v42 = vmul.f32 %v304_v38, %v202_v29  ;;  %v248_v43 = vmul.f32 %v244_v33, %v87_v54 }
  0xc9   :  { %v209_v32 = vadd.f32 %v205_v11, %v193_v19  ;;  %v210_v44 = vadd.f32 %v206_v39, %v194_v21  ;;  %v251_v45 = vadd.f32 %v247_v37, %v231_v22 }
  0xca   :  { %v249_v46 = vmul.f32 %v245_v7, %v88_v55  ;;  %v250_v8 = vmul.f32 %v246_v42, %v89_v36  ;;  %v252_v47 = vadd.f32 %v248_v43, %v232_v41 }
  0xcb   :  { %v233_v48 = vadd.f32 %v229_v12, %v209_v32  ;;  %v234_v49 = vadd.f32 %v230_v40, %v210_v44 }
  0xcc   :  { %v259_v31 = vcombine.low %v251_v45, %v252_v47 }
  0xcd   :  { %v253_v50 = vadd.f32 %v249_v46, %v233_v48  ;;  %v254_v51 = vadd.f32 %v250_v8, %v234_v49 }
  0xce   :  { %263 = vst [vmem:[#allocation7] sm:$0xff] %v259_v31 }
  0xcf   :  { %v260_v52 = vcombine.low %v253_v50, %v254_v51 }
  0xd1   :  { %264 = vst [vmem:[#allocation7 + $0x8] sm:$0xff] %v260_v52 }
  0xd2   :  { %360 = shalt.err (!%p357_p6)
}
  0xd3   :  { %s361_s10 = scalar_lea.hbm %s645_s2, 256 }
  0xd4   :  { %p362_p7 = scmp.ne.s32.totalorder %s645_s2, %s361_s10  ;;  %p365_p8 = scmp.lt.u32.totalorder %s361_s10, %s645_s2 }
  0xd6   :  { %p367_p9 = pnand %p365_p8, %p362_p7 }
  0xd8   :  { %370 = shalt.err (!%p367_p9)
}
  0xd9   :  { %274 = dma.vmem_to_hbm [thread:$0]  %s272_s6, 256, %s645_s2, [#allocation4]  }
  0xda   :  { %375 = dma.done.wait [#allocation4], 256  }
  0xdb   :  { %376 = vsyncadd [#allocation4], 4294967040 }
  0xdc   :  { %278 = vsyncpa [#allocation3], 1 }
  0xdd   :  { %279 = vsyncpa [#allocation6], 1 }
  0xde   :  { %280 = vsyncpa [#allocation4], 1 }

</bundles_post_ra>
